<compile_context>
chip_gen: v7x
topology: tpu7x:2x2x1
jax: 0.10.0
libtpu: 0.0.40
codegen_flags: <defaults>
</compile_context>

<pallas_src>
import functools

import jax
import jax.numpy as jnp
from jax import lax
from jax.experimental import pallas as pl
from jax.experimental.pallas import tpu as pltpu

_LANE = 128
_NEG_INF = -1e30  # finite "-inf" for masking padded classes (exp() underflows to 0 exactly)


def _pad_up(x: int, m: int) -> int:
    return ((x + m - 1) // m) * m


def _logits_loss_kernel(it_ref, table_ref, logits_ref, loss_ref, *, num_classes, inv_n):
    # it_ref     : (N, 2) int32  -- col 0 = idx, col 1 = targets
    # table_ref  : (V_pad, C_pad) f32
    # logits_ref : (N, C_pad) f32   (VMEM, lane-dense)
    # loss_ref   : (1, 1) f32       (SMEM scalar output)
    N = it_ref.shape[0]
    V_pad, C_pad = table_ref.shape

    idx = it_ref[:, 0:1]                                           # (N, 1) int32
    tgt = it_ref[:, 1:2]                                           # (N, 1) int32

    # Single iota, reused for the embedding one-hot and the target pick (V_pad == C_pad here).
    vocab_iota = lax.broadcasted_iota(jnp.int32, (N, V_pad), 1)    # (N, V_pad)
    onehot = (vocab_iota == idx).astype(jnp.float32)               # (N, V_pad)

    # Embedding lookup as one aligned MXU matmul: one_hot(idx) @ table -> (N, C_pad).
    logits = jnp.dot(onehot, table_ref[...], preferred_element_type=jnp.float32)
    logits_ref[...] = logits

    class_iota = vocab_iota if C_pad == V_pad else lax.broadcasted_iota(
        jnp.int32, (N, C_pad), 1)
    valid = class_iota < num_classes                               # mask padded classes

    # cross_entropy = mean_n [ logsumexp(logits_n over real classes) - logits_n[target_n] ]
    masked = jnp.where(valid, logits, _NEG_INF)
    m = jnp.max(masked, axis=1, keepdims=True)                     # (N, 1)
    lse = m + jnp.log(jnp.sum(jnp.exp(masked - m), axis=1, keepdims=True))
    picked = jnp.sum(jnp.where(class_iota == tgt, logits, 0.0),
                     axis=1, keepdims=True)                        # (N, 1), tgt < num_classes
    loss_ref[0, 0] = jnp.sum(lse - picked) * inv_n


def _logits_kernel(idx_ref, table_ref, logits_ref):
    # targets is None path: only the embedding lookup.
    N = idx_ref.shape[0]
    V_pad, _ = table_ref.shape
    idx = idx_ref[:, 0:1]
    vocab_iota = lax.broadcasted_iota(jnp.int32, (N, V_pad), 1)
    onehot = (vocab_iota == idx).astype(jnp.float32)
    logits_ref[...] = jnp.dot(onehot, table_ref[...], preferred_element_type=jnp.float32)


def bigram_forward(idx, table, targets=None):
    """Mirror of BigramLanguageModel.forward. Returns (logits, loss_or_None)."""
    B, T = idx.shape
    V, C = table.shape
    N = B * T
    V_pad = _pad_up(V, _LANE)
    C_pad = _pad_up(C, _LANE)

    # Zero-pad the table to a lane-aligned (V_pad, C_pad) slab (one-time wrapper cost).
    table_p = jnp.zeros((V_pad, C_pad), jnp.float32).at[:V, :C].set(
        table.astype(jnp.float32))

    vmem_spec = pl.BlockSpec(memory_space=pltpu.MemorySpace.VMEM)
    smem_spec = pl.BlockSpec(memory_space=pltpu.MemorySpace.SMEM)

    if targets is None:
        idx_flat = idx.reshape(N, 1).astype(jnp.int32)
        logits_pad = pl.pallas_call(
            _logits_kernel,
            out_shape=jax.ShapeDtypeStruct((N, C_pad), jnp.float32),
            in_specs=[vmem_spec, vmem_spec],
            out_specs=vmem_spec,
        )(idx_flat, table_p)
        return logits_pad[:, :C].reshape(B, T, C).astype(table.dtype), None

    # NOTE: targets must satisfy 0 <= target < C (PyTorch cross_entropy would raise;
    # here an out-of-range target would silently give a wrong loss).
    idx_tgt = jnp.stack(
        [idx.reshape(N).astype(jnp.int32), targets.reshape(N).astype(jnp.int32)], axis=1)

    kernel = functools.partial(_logits_loss_kernel, num_classes=C, inv_n=1.0 / N)
    logits_pad, loss = pl.pallas_call(
        kernel,
        out_shape=(
            jax.ShapeDtypeStruct((N, C_pad), jnp.float32),
            jax.ShapeDtypeStruct((1, 1), jnp.float32),
        ),
        in_specs=[vmem_spec, vmem_spec],
        out_specs=(vmem_spec, smem_spec),
    )(idx_tgt, table_p)
    return logits_pad[:, :C].reshape(B, T, C).astype(table.dtype), loss[0, 0]


def _reference(idx, table, targets):
    """Pure-JAX mirror of the PyTorch forward."""
    logits = table[idx]                       # (B, T, C)
    B, T, C = logits.shape
    lf = logits.reshape(B * T, C)
    tf = targets.reshape(B * T)
    logp = jax.nn.log_softmax(lf, axis=-1)
    loss = -jnp.mean(logp[jnp.arange(B * T), tf])
    return logits, loss


if __name__ == "__main__":
    # Shapes consistent with the module: block_size=8, batch_size=4 (estimate_loss defaults).
    # Standard bigram setup: n_embed == vocab_size so targets index valid classes.
    B, T = 4, 8
    vocab_size = 65
    n_embed = 65
    dtype = jnp.float32

    key = jax.random.PRNGKey(0)
    k_tab, k_idx, k_tgt = jax.random.split(key, 3)

    table = jax.random.normal(k_tab, (vocab_size, n_embed), dtype) * 0.1
    idx = jax.random.randint(k_idx, (B, T), 0, vocab_size, dtype=jnp.int32)
    targets = jax.random.randint(k_tgt, (B, T), 0, n_embed, dtype=jnp.int32)

    # forward with targets -> (logits, loss)
    logits, loss = bigram_forward(idx, table, targets)
    logits = jax.block_until_ready(logits)
    loss = jax.block_until_ready(loss)

    # forward without targets -> (logits, None)
    logits_only, none_loss = bigram_forward(idx, table, None)
    logits_only = jax.block_until_ready(logits_only)

    ref_logits, ref_loss = _reference(idx, table, targets)

    assert logits.shape == (B, T, n_embed)
    assert none_loss is None
    assert jnp.allclose(logits, ref_logits, atol=1e-5, rtol=1e-5), "logits mismatch"
    assert jnp.allclose(logits_only, ref_logits, atol=1e-5, rtol=1e-5), "logits-only mismatch"
    assert jnp.allclose(loss, ref_loss, atol=1e-4, rtol=1e-4), "loss mismatch"

    print("KERNEL_OK")
</pallas_src>

<mosaic_0001>
module attributes {stable_mosaic.version = 11 : i64} {
  func.func @_logits_loss_kernel(%arg0: memref<32x2xi32, #tpu.memory_space<vmem>>, %arg1: memref<128x128xf32, #tpu.memory_space<vmem>>, %arg2: memref<32x128xf32, #tpu.memory_space<vmem>>, %arg3: memref<1x1xf32, #tpu.memory_space<smem>>) attributes {dimension_semantics = [], scalar_prefetch = 0 : i64, scratch_operands = 0 : i64, tpu.core_type = #tpu.core_type<tc>} {
    %c0 = arith.constant 0 : index
    %c0_0 = arith.constant 0 : index
    %0 = vector.load %arg0[%c0, %c0_0] : memref<32x2xi32, #tpu.memory_space<vmem>>, vector<32x1xi32>
    %c0_1 = arith.constant 0 : index
    %c1 = arith.constant 1 : index
    %1 = vector.load %arg0[%c0_1, %c1] : memref<32x2xi32, #tpu.memory_space<vmem>>, vector<32x1xi32>
    %2 = tpu.iota {dimensions = array<i32: 1>} : vector<32x128xi32>
    %3 = vector.broadcast %0 : vector<32x1xi32> to vector<32x128xi32>
    %4 = arith.cmpi eq, %2, %3 : vector<32x128xi32>
    %5 = arith.extui %4 : vector<32x128xi1> to vector<32x128xi32>
    %6 = arith.sitofp %5 : vector<32x128xi32> to vector<32x128xf32>
    %c0_2 = arith.constant 0 : index
    %c0_3 = arith.constant 0 : index
    %7 = vector.load %arg1[%c0_2, %c0_3] : memref<128x128xf32, #tpu.memory_space<vmem>>, vector<128x128xf32>
    %cst = arith.constant dense<0.000000e+00> : vector<32x128xf32>
    %8 = tpu.matmul %6, %7, %cst {dimension_numbers = #tpu.dot_dimension_numbers<[1], [0], [0], [1], [0, 0, 1, 1], [], []>} : vector<32x128xf32>, vector<128x128xf32>, vector<32x128xf32> -> vector<32x128xf32>
    %c0_4 = arith.constant 0 : index
    %c0_5 = arith.constant 0 : index
    %9 = vector.load %arg2[%c0_4, %c0_5] : memref<32x128xf32, #tpu.memory_space<vmem>>, vector<32x128xf32>
    tpu.vector_store %arg2[%c0_4, %c0_5], %8 {strides = array<i32>} : memref<32x128xf32, #tpu.memory_space<vmem>>, vector<32x128xf32>,
    %c65_i32 = arith.constant 65 : i32
    %10 = vector.broadcast %c65_i32 : i32 to vector<32x128xi32>
    %11 = arith.cmpi slt, %2, %10 : vector<32x128xi32>
    %cst_6 = arith.constant -1.000000e+30 : f32
    %12 = vector.broadcast %cst_6 : f32 to vector<32x128xf32>
    %13 = arith.select %11, %8, %12 : vector<32x128xi1>, vector<32x128xf32>
    %cst_7 = arith.constant dense<0xFF800000> : vector<32xf32>
    %14 = vector.multi_reduction <maximumf>, %13, %cst_7 [1] : vector<32x128xf32> to vector<32xf32>
    %15 = vector.shape_cast %14 : vector<32xf32> to vector<32x1xf32>
    %16 = vector.broadcast %15 : vector<32x1xf32> to vector<32x128xf32>
    %17 = arith.subf %13, %16 : vector<32x128xf32>
    %18 = math.exp %17 : vector<32x128xf32>
    %cst_8 = arith.constant dense<0.000000e+00> : vector<32xf32>
    %19 = vector.multi_reduction <add>, %18, %cst_8 [1] : vector<32x128xf32> to vector<32xf32>
    %20 = vector.shape_cast %19 : vector<32xf32> to vector<32x1xf32>
    %21 = math.log %20 : vector<32x1xf32>
    %22 = arith.addf %15, %21 : vector<32x1xf32>
    %23 = vector.broadcast %1 : vector<32x1xi32> to vector<32x128xi32>
    %24 = arith.cmpi eq, %2, %23 : vector<32x128xi32>
    %cst_9 = arith.constant 0.000000e+00 : f32
    %25 = vector.broadcast %cst_9 : f32 to vector<32x128xf32>
    %26 = arith.select %24, %8, %25 : vector<32x128xi1>, vector<32x128xf32>
    %cst_10 = arith.constant dense<0.000000e+00> : vector<32xf32>
    %27 = vector.multi_reduction <add>, %26, %cst_10 [1] : vector<32x128xf32> to vector<32xf32>
    %28 = vector.shape_cast %27 : vector<32xf32> to vector<32x1xf32>
    %29 = arith.subf %22, %28 : vector<32x1xf32>
    %30 = vector.shape_cast %29 : vector<32x1xf32> to vector<1x32x1xf32>
    %cst_11 = arith.constant dense<0.000000e+00> : vector<1xf32>
    %31 = vector.multi_reduction <add>, %30, %cst_11 [1, 2] : vector<1x32x1xf32> to vector<1xf32>
    %32 = vector.shape_cast %31 : vector<1xf32> to vector<1x1x1xf32>
    %33 = vector.extract %32[0, 0, 0] : f32 from vector<1x1x1xf32>
    %cst_12 = arith.constant 3.125000e-02 : f32
    %34 = arith.mulf %33, %cst_12 : f32
    %c0_13 = arith.constant 0 : index
    %c0_14 = arith.constant 0 : index
    %35 = memref.load %arg3[%c0_13, %c0_14] : memref<1x1xf32, #tpu.memory_space<smem>>
    memref.store %34, %arg3[%c0_13, %c0_14] : memref<1x1xf32, #tpu.memory_space<smem>>
    return
  }
}

</mosaic_0001>

<bundles_post_ra>
// kernel: tpu_custom_call.1
= control target key start
LH: loop header
LB: loop body
LE: loop exit
PB: predicated region body
PF: predicated region fallthrough
CT: control target
= control target key end

     0   :  { %9 = vsyncpa [#allocation3], 0  ;;  %s608_s0 = inlined_call_operand.vmem [shape: s32[32,2], index: 0, kind: input, shape index: {}]   ;;  %s609_s1 = inlined_call_operand.hbm [shape: f32[128,128], index: 1, kind: input, shape index: {}]   ;;  %s610_s2 = inlined_call_operand.hbm [shape: f32[32,128], index: 2, kind: output, shape index: {0}]   ;;  %s611_s3 = inlined_call_operand.hbm [shape: f32[1,1], index: 3, kind: output, shape index: {1}]  }
   0x1   :  { %10 = vsyncpa [#allocation4], 0 }
   0x2   :  { %11 = vsyncpa [#allocation5], 0  ;;  %s495_s12 = smov [#allocation2]   ;;  %s435_s16 = scalar_lea.hbm %s609_s1, 2048 }
   0x3   :  { %s19_s13 = sshll.u32 %s495_s12, 4  ;;  %p436_p0 = scmp.ne.s32.totalorder %s609_s1, %s435_s16  ;;  %s20_s13 = int_to_ptr.vmem [resolvable:$true] %s19_s13 }
   0x4   :  { %p439_p1 = scmp.lt.u32.totalorder %s435_s16, %s609_s1 }
   0x6   :  { %p441_p2 = pnand %p439_p1, %p436_p0 }
   0x8   :  { %444 = shalt.err (!%p441_p2)
}
   0x9   :  { %s445_s21 = scalar_lea.vmem %s20_s13, 2048  ;;  %p450_p4 = scmp.lt.s32.totalorder %s20_s13, %s20_s13 }
   0xa   :  { %p446_p3 = scmp.ne.s32.totalorder %s20_s13, %s445_s21  ;;  %p451_p5 = scmp.lt.s32.totalorder %s445_s21, %s445_s21 }
   0xc   :  { %p452_p6 = por %p451_p5, %p450_p4 }
   0xe   :  { %p453_p7 = pnand %p452_p6, %p446_p3 }
  0x10   :  { %456 = shalt.err (!%p453_p7)
}
  0x11   :  { %s496_s22 = smov 128   ;;  %s497_s23 = smov 8  }
  0x12   :  { %25 = dma.hbm_to_vmem [thread:$0]  %s609_s1, 2048, %s20_s13, [#allocation3], %s496_s22, %s496_s22, %s497_s23  }
  0x13   :  { %489 = dma.done.wait [#allocation3], 2048  }
  0x14   :  { %490 = vsyncadd [#allocation3], 4294965248  ;;  %v498_v0 = vmov 0   ;;  %v541_v1 = vld [vmem:[%s608_s0 + $0x10] sm:$0xff]  ;;  %v546_v2 = vld [vmem:[%s608_s0] sm:$0xff]  ;;  %v33_v29 = vlaneseq  ;;  %v499_v33 = vmov 1.0  }
  0x15   :  { %416 = vset.pattern.permute.xlu1 %v498_v0  ;;  %415 = vset.pattern.permute.xlu0 %v498_v0  ;;  %v553_v3 = vld [vmem:[%s608_s0 + $0x18] sm:$0xff]  ;;  %v59_v4 = vld [vmem:[#allocation2] sm:$0xff]  ;;  %v60_v5 = vld [vmem:[#allocation2 + $0x8] sm:$0xff]  ;;  %v500_v36 = vmov 1   ;;  %vm241_vm9 = vcmask 7168  }
  0x16   :  { %42 = vperm.xlu1 %416, %v541_v1   ;;  %36 = vperm.xlu0 %415, %v546_v2   ;;  %v558_v6 = vld [vmem:[%s608_s0 + $0x8] sm:$0xff]  ;;  %v357_v7 = vpack.c.bf16 %v60_v5, %v59_v4  ;;  %v61_v8 = vld [vmem:[#allocation2 + $0x10] sm:$0xff]  ;;  %v62_v9 = vld [vmem:[#allocation2 + $0x18] sm:$0xff]  ;;  %v562_v30 = vand.u32 127, %v33_v29  ;;  %s501_s0 = smov [#allocation6]  }
  0x17   :  { %v361_v10 = vpack.c.bf16 %v62_v9, %v61_v8  ;;  %v63_v11 = vld [vmem:[#allocation2 + $0x20] sm:$0xff]  ;;  %v64_v12 = vld [vmem:[#allocation2 + $0x28] sm:$0xff]  ;;  %v65_v14 = vld [vmem:[#allocation2 + $0x30] sm:$0xff]  ;;  %s266_s6 = sshll.u32 %s501_s0, 4  ;;  %s267_s6 = int_to_ptr.vmem [resolvable:$true] %s266_s6 }
  0x18   :  { %358 = vmatprep.subr.bf16.mxu0 %v357_v7  ;;  %389 = vmatprep.subr.bf16.mxu1 %v357_v7  ;;  %v365_v13 = vpack.c.bf16 %v64_v12, %v63_v11  ;;  %v66_v15 = vld [vmem:[#allocation2 + $0x38] sm:$0xff]  ;;  %v67_v17 = vld [vmem:[#allocation2 + $0x40] sm:$0xff]  ;;  %v68_v18 = vld [vmem:[#allocation2 + $0x48] sm:$0xff]  ;;  %vm164_vm4 = vcmp.lt.s32.totalorder %v562_v30, 65  ;;  %s457_s7 = scalar_lea.vmem %s267_s6, 512  ;;  %p462_p9 = scmp.lt.s32.totalorder %s267_s6, %s267_s6 }
  0x19   :  { %360 = vmatpush3.bf16.msra.mxu0 %v357_v7  ;;  %397 = vmatpush3.bf16.msra.mxu1 %v357_v7  ;;  %v369_v16 = vpack.c.bf16 %v66_v15, %v65_v14  ;;  %v373_v19 = vpack.c.bf16 %v68_v18, %v67_v17  ;;  %v69_v20 = vld [vmem:[#allocation2 + $0x50] sm:$0xff]  ;;  %v70_v21 = vld [vmem:[#allocation2 + $0x58] sm:$0xff]  ;;  %v71_v23 = vld [vmem:[#allocation2 + $0x60] sm:$0xff]  ;;  %p458_p8 = scmp.ne.s32.totalorder %s267_s6, %s457_s7  ;;  %p463_p10 = scmp.lt.s32.totalorder %s457_s7, %s457_s7 }
  0x1a   :  { %45 = vperm.xlu1 %416, %v553_v3   ;;  %39 = vperm.xlu0 %415, %v558_v6   ;;  %v377_v22 = vpack.c.bf16 %v70_v21, %v69_v20  ;;  %v72_v24 = vld [vmem:[#allocation2 + $0x68] sm:$0xff]  ;;  %v73_v26 = vld [vmem:[#allocation2 + $0x70] sm:$0xff]  ;;  %v74_v27 = vld [vmem:[#allocation2 + $0x78] sm:$0xff] }
  0x1b   :  { %362 = vmatprep.subr.bf16.mxu0 %v361_v10  ;;  %390 = vmatprep.subr.bf16.mxu1 %v361_v10  ;;  %v381_v25 = vpack.c.bf16 %v72_v24, %v71_v23  ;;  %v385_v28 = vpack.c.bf16 %v74_v27, %v73_v26  ;;  %p464_p11 = por %p463_p10, %p462_p9 }
  0x1d   :  { %364 = vmatpush3.bf16.msra.mxu0 %v361_v10  ;;  %398 = vmatpush3.bf16.msra.mxu1 %v361_v10  ;;  %p465_p12 = pnand %p464_p11, %p458_p8 }
  0x1e   :  { %366 = vmatprep.subr.bf16.mxu0 %v365_v13  ;;  %391 = vmatprep.subr.bf16.mxu1 %v365_v13 }
  0x1f   :  { %417 = vset.pattern.permute.xlu1 %v500_v36  ;;  %418 = vset.pattern.permute.xlu0 %v500_v36 }
  0x21   :  { %368 = vmatpush3.bf16.msra.mxu0 %v365_v13  ;;  %399 = vmatpush3.bf16.msra.mxu1 %v365_v13 }
  0x22   :  { %370 = vmatprep.subr.bf16.mxu0 %v369_v16  ;;  %392 = vmatprep.subr.bf16.mxu1 %v369_v16 }
  0x25   :  { %372 = vmatpush3.bf16.msra.mxu0 %v369_v16  ;;  %400 = vmatpush3.bf16.msra.mxu1 %v369_v16 }
  0x26   :  { %374 = vmatprep.subr.bf16.mxu0 %v373_v19  ;;  %393 = vmatprep.subr.bf16.mxu1 %v373_v19 }
  0x29   :  { %376 = vmatpush3.bf16.msra.mxu0 %v373_v19  ;;  %401 = vmatpush3.bf16.msra.mxu1 %v373_v19 }
  0x2a   :  { %378 = vmatprep.subr.bf16.mxu0 %v377_v22  ;;  %394 = vmatprep.subr.bf16.mxu1 %v377_v22 }
  0x2d   :  { %380 = vmatpush3.bf16.msra.mxu0 %v377_v22  ;;  %402 = vmatpush3.bf16.msra.mxu1 %v377_v22 }
  0x2e   :  { %382 = vmatprep.subr.bf16.mxu0 %v381_v25  ;;  %395 = vmatprep.subr.bf16.mxu1 %v381_v25 }
  0x31   :  { %384 = vmatpush3.bf16.msra.mxu0 %v381_v25  ;;  %403 = vmatpush3.bf16.msra.mxu1 %v381_v25 }
  0x32   :  { %386 = vmatprep.subr.bf16.mxu0 %v385_v28  ;;  %396 = vmatprep.subr.bf16.mxu1 %v385_v28 }
  0x35   :  { %388 = vmatpush3.bf16.msra.mxu0 %v385_v28  ;;  %404 = vmatpush3.bf16.msra.mxu1 %v385_v28 }
  0x95   :  { %v43_v31 = vpop.permute.xlu1 %42  ;;  %v37_v32 = vpop.permute.xlu0 %36 }
  0x96   :  { %vm47_vm0 = vcmp.eq.s32.totalorder %v562_v30, %v37_v32  ;;  %vm49_vm1 = vcmp.eq.s32.totalorder %v562_v30, %v43_v31 }
  0x97   :  { %351 = vmatprep.mubr.msk.f32.mxu0 %vm47_vm0, %v499_v33  ;;  %354 = vmatprep.mubr.msk.f32.mxu1 %vm49_vm1, %v499_v33 }
  0x99   :  { %v46_v34 = vpop.permute.xlu1 %45  ;;  %v40_v35 = vpop.permute.xlu0 %39 }
  0x9a   :  { %vm50_vm2 = vcmp.eq.s32.totalorder %v562_v30, %v46_v34  ;;  %vm48_vm3 = vcmp.eq.s32.totalorder %v562_v30, %v40_v35 }
  0x9b   :  { %352 = vmatmul.mubr.msk.f32.vlgmr.msra.gmra.mrb[0].mxu0 %vm48_vm3, %v499_v33  ;;  %355 = vmatmul.mubr.msk.f32.vlgmr.msra.gmra.mrb[0].mxu1 %vm50_vm2, %v499_v33 }
 0x16e   :  { %v353_v37 = vpop.f32.mrb[0].mxu0  ;;  %v356_v38 = vpop.f32.mrb[0].mxu1 }
 0x16f   :  { %161 = vst [vmem:[#allocation6 + $0x8] sm:$0xff] %v353_v37  ;;  %163 = vst [vmem:[#allocation6 + $0x18] sm:$0xff] %v356_v38  ;;  %v141_v39 = vpop.f32.mrb[1].mxu0  ;;  %v151_v40 = vpop.f32.mrb[1].mxu1  ;;  %v166_v41 = vsel %vm164_vm4, %v353_v37, -1e+30 }
 0x170   :  { %160 = vst [vmem:[#allocation6] sm:$0xff] %v141_v39  ;;  %162 = vst [vmem:[#allocation6 + $0x10] sm:$0xff] %v151_v40  ;;  %171 = vmax.xlane.f32.xlu1 %v166_v41  ;;  %v165_v42 = vsel %vm164_vm4, %v141_v39, -1e+30  ;;  %v167_v43 = vsel %vm164_vm4, %v151_v40, -1e+30 }
 0x171   :  { %169 = vmax.xlane.f32.xlu0 %v165_v42  ;;  %v168_v44 = vsel %vm164_vm4, %v356_v38, -1e+30 }
 0x175   :  { %173 = vmax.xlane.f32.xlu0 %v167_v43 }
 0x179   :  { %175 = vmax.xlane.f32.xlu0 %v168_v44 }
 0x181   :  { %210 = vperm.xlu1 %417, %v546_v2  }
 0x185   :  { %216 = vperm.xlu1 %417, %v541_v1  }
 0x189   :  { %219 = vperm.xlu1 %417, %v553_v3  }
 0x18f   :  { %213 = vperm.xlu0 %418, %v558_v6  }
 0x1fd   :  { %v172_v45 = vpop.xlane.xlu1 %171 }
 0x1fe   :  { %v178_v46 = vsub.f32 %v166_v41, %v172_v45  ;;  %v170_v47 = vpop.xlane.xlu0 %169 }
 0x1ff   :  { %v177_v48 = vsub.f32 %v165_v42, %v170_v47 }
 0x200   :  { %v183_v49 = vmul.f32 1.442695, %v178_v46 }
 0x201   :  { %v181_v50 = vmul.f32 1.442695, %v177_v48  ;;  %v211_v51 = vpop.permute.xlu1 %210 }
 0x202   :  { %419 = vpow2.f32 %v183_v49  ;;  %v174_v52 = vpop.xlane.xlu0 %173  ;;  %vm221_vm6 = vcmp.eq.s32.totalorder %v562_v30, %v211_v51 }
 0x203   :  { %421 = vpow2.f32 %v181_v50  ;;  %v179_v53 = vsub.f32 %v167_v43, %v174_v52  ;;  %v225_v2 = vsel %vm221_vm6, %v141_v39, 0.0 }
 0x205   :  { %v185_v54 = vmul.f32 1.442695, %v179_v53  ;;  %v217_v55 = vpop.permute.xlu1 %216 }
 0x206   :  { %v176_v56 = vpop.xlane.xlu0 %175  ;;  %vm223_vm8 = vcmp.eq.s32.totalorder %v562_v30, %v217_v55 }
 0x207   :  { %423 = vpow2.f32 %v185_v54  ;;  %v180_v57 = vsub.f32 %v168_v44, %v176_v56  ;;  %v227_v4 = vsel %vm223_vm8, %v151_v40, 0.0 }
 0x209   :  { %v187_v58 = vmul.f32 1.442695, %v180_v57  ;;  %v220_v59 = vpop.permute.xlu1 %219 }
 0x20a   :  { %vm224_vm5 = vcmp.eq.s32.totalorder %v562_v30, %v220_v59 }
 0x20b   :  { %425 = vpow2.f32 %v187_v58  ;;  %v228_v62 = vsel %vm224_vm5, %v356_v38, 0.0 }
 0x20c   :  { %v420_v60 = vpop.eup %419 }
 0x20d   :  { %v422_v61 = vpop.eup %421  ;;  %191 = vadd.xlane.f32.xlu0 %v420_v60 }
 0x20e   :  { %189 = vadd.xlane.f32.xlu1 %v422_v61  ;;  %v214_v1 = vpop.permute.xlu0 %213 }
 0x20f   :  { %vm222_vm7 = vcmp.eq.s32.totalorder %v562_v30, %v214_v1 }
 0x210   :  { %v226_v3 = vsel %vm222_vm7, %v353_v37, 0.0 }
 0x211   :  { %v424_v63 = vpop.eup %423  ;;  %235 = vadd.xlane.f32.xlu0 %v228_v62 }
 0x212   :  { %193 = vadd.xlane.f32.xlu1 %v424_v63 }
 0x215   :  { %v426_v0 = vpop.eup %425 }
 0x216   :  { %195 = vadd.xlane.f32.xlu1 %v426_v0 }
 0x21a   :  { %229 = vadd.xlane.f32.xlu1 %v225_v2 }
 0x21e   :  { %231 = vadd.xlane.f32.xlu1 %v226_v3 }
 0x222   :  { %233 = vadd.xlane.f32.xlu1 %v227_v4 }
 0x29a   :  { %v192_v5 = vpop.xlane.xlu0 %191 }
 0x29b   :  { %427 = vlog2.f32 %v192_v5  ;;  %v190_v6 = vpop.xlane.xlu1 %189 }
 0x29c   :  { %429 = vlog2.f32 %v190_v6 }
 0x29e   :  { %v236_v30 = vpop.xlane.xlu0 %235 }
 0x29f   :  { %v194_v7 = vpop.xlane.xlu1 %193 }
 0x2a0   :  { %431 = vlog2.f32 %v194_v7 }
 0x2a3   :  { %v196_v8 = vpop.xlane.xlu1 %195 }
 0x2a4   :  { %433 = vlog2.f32 %v196_v8 }
 0x2a5   :  { %v428_v9 = vpop.eup %427 }
 0x2a6   :  { %v430_v10 = vpop.eup %429  ;;  %v200_v11 = vmul.f32 0.6931472, %v428_v9 }
 0x2a7   :  { %v198_v12 = vmul.f32 0.6931472, %v430_v10  ;;  %v230_v13 = vpop.xlane.xlu1 %229 }
 0x2a8   :  { %v206_v16 = vadd.f32 %v200_v11, %v172_v45 }
 0x2a9   :  { %v205_v14 = vadd.f32 %v198_v12, %v170_v47 }
 0x2aa   :  { %v432_v15 = vpop.eup %431 }
 0x2ab   :  { %v202_v17 = vmul.f32 0.6931472, %v432_v15  ;;  %v237_v18 = vsub.f32 %v205_v14, %v230_v13  ;;  %v232_v19 = vpop.xlane.xlu1 %231 }
 0x2ac   :  { %v238_v20 = vsub.f32 %v206_v16, %v232_v19 }
 0x2ad   :  { %v207_v21 = vadd.f32 %v202_v17, %v174_v52  ;;  %v242_v23 = vsel %vm241_vm9, %v237_v18, 0.0 }
 0x2ae   :  { %v434_v22 = vpop.eup %433  ;;  %v243_v24 = vsel %vm241_vm9, %v238_v20, 0.0 }
 0x2af   :  { %v204_v25 = vmul.f32 0.6931472, %v434_v22  ;;  %v234_v26 = vpop.xlane.xlu1 %233  ;;  %v244_v29 = vadd.f32 %v243_v24, %v242_v23 }
 0x2b0   :  { %v239_v27 = vsub.f32 %v207_v21, %v234_v26 }
 0x2b1   :  { %v208_v28 = vadd.f32 %v204_v25, %v176_v56 }
 0x2b2   :  { %v245_v31 = vsel %vm241_vm9, %v239_v27, 0.0 }
 0x2b3   :  { %v240_v32 = vsub.f32 %v208_v28, %v236_v30  ;;  %v246_v33 = vadd.f32 %v245_v31, %v244_v29 }
 0x2b5   :  { %v247_v34 = vsel %vm241_vm9, %v240_v32, 0.0 }
 0x2b6   :  { %v248_v35 = vadd.f32 %v247_v34, %v246_v33 }
 0x2b8   :  { %249 = vadd.xlane.f32.xlu1 %v248_v35 }
 0x2b9   :  { %468 = shalt.err (!%p465_p12)
}
 0x2ba   :  { %s469_s10 = scalar_lea.hbm %s610_s2, 512 }
 0x2bb   :  { %p470_p13 = scmp.ne.s32.totalorder %s610_s2, %s469_s10  ;;  %p473_p0 = scmp.lt.u32.totalorder %s469_s10, %s610_s2 }
 0x2bd   :  { %p475_p1 = pnand %p473_p0, %p470_p13 }
 0x2bf   :  { %478 = shalt.err (!%p475_p1)
}
 0x2c0   :  { %272 = dma.vmem_to_hbm [thread:$0]  %s267_s6, 512, %s610_s2, [#allocation4], %s496_s22, %s496_s22, %s497_s23  }
 0x2c1   :  { %s479_s21 = scalar_lea.hbm %s611_s3, 16 }
 0x2c2   :  { %p480_p2 = scmp.ne.s32.totalorder %s611_s3, %s479_s21  ;;  %p483_p3 = scmp.lt.u32.totalorder %s479_s21, %s611_s3 }
 0x2c4   :  { %p485_p4 = pnand %p483_p3, %p480_p2 }
 0x345   :  { %v250_v36 = vpop.xlane.xlu1 %249 }
 0x346   :  { %v251_v37 = vrot.slane %v250_v36, 4 }
 0x348   :  { %v252_v38 = vadd.f32 %v251_v37, %v250_v36 }
 0x34a   :  { %v253_v39 = vrot.slane %v252_v38, 2 }
 0x34c   :  { %v254_v40 = vadd.f32 %v253_v39, %v252_v38 }
 0x34e   :  { %v255_v41 = vrot.slane %v254_v40, 1 }
 0x350   :  { %v256_v42 = vadd.f32 %v255_v41, %v254_v40 }
 0x352   :  { %405 = vpush %v256_v42 }
 0x383   :  { %s406_s17 = spop %405 }
 0x384   :  { %s258_s18 = smul.f32 0.03125, %s406_s17 }
 0x386   :  { %260 = sst [smem:[#allocation7]] %s258_s18 }
 0x387   :  { %488 = shalt.err (!%p485_p4)
}
 0x388   :  { %s502_s23 = smov [#allocation7]  }
 0x389   :  { %280 = dma.smem_to_hbm %s502_s23, 16, %s611_s3, [#allocation5]  }
 0x38a   :  { %491 = dma.done.wait [#allocation4], 512  }
 0x38b   :  { %492 = vsyncadd [#allocation4], 4294966784 }
 0x38c   :  { %493 = dma.done.wait [#allocation5], 16  }
 0x38d   :  { %494 = vsyncadd [#allocation5], 4294967280 }
 0x38e   :  { %287 = sfence }
 0x38f   :  { %288 = vsyncpa [#allocation3], 1 }
 0x390   :  { %289 = vsyncpa [#allocation4], 1 }
 0x391   :  { %290 = vsyncpa [#allocation5], 1 }

</bundles_post_ra>
